<compile_context>
chip_gen: v7x
topology: tpu7x:2x2x1
jax: 0.10.0
libtpu: 0.0.40
codegen_flags: <defaults>
</compile_context>

<pallas_src>
import jax
import jax.numpy as jnp
from jax import lax
from jax.experimental import pallas as pl
from jax.experimental.pallas import tpu as pltpu

FACTOR = 1e-4  # TODO(synk): `factor` is an undefined global in the reference; small jitter used.
# TODO(synk): nn.Dropout layers are treated as identity (eval-mode forward); `dropout_rate`
#             is also an undefined global in the reference.

MXU_DTYPE = jnp.bfloat16          # operand dtype of the big N-scaled matmuls (f32 accumulate).
                                  # Set to jnp.float32 to reproduce full-f32 numerics.
N_TILE_MAX = 512                  # rows of X per grid step (streamed, double-buffered)
VMEM_LIMIT_BYTES = 48 * 1024 * 1024   # explicit scoped-VMEM cap (safe on v5e/v6e/v7x)


# ---------------------------------------------------------------------------
# small helpers
# ---------------------------------------------------------------------------
def _round_up(a, b):
    return ((a + b - 1) // b) * b


def _smem_spec():
    return pl.BlockSpec(memory_space=pltpu.MemorySpace.SMEM)


def _const_spec(shape):
    # whole-array block with a constant index map -> loaded once, resident across the grid
    nd = len(shape)
    return pl.BlockSpec(shape, lambda *_: (0,) * nd)


def _stream_spec(tile, width):
    return pl.BlockSpec((tile, width), lambda i: (i, 0))


def _celu(v):
    # CELU with alpha=1: v if v > 0 else exp(v) - 1   (expm1 would be marginally more accurate)
    return jnp.where(v > 0, v, jnp.exp(jnp.minimum(v, 0.0)) - 1.0)


def _rbf_from_parts(x2_col, xz, z2_row, c):
    # exp(clamp(-0.5 * max(r2, 0) + 2*log_std, -10, 10)); matches the torch reference.
    r2 = jnp.maximum(x2_col - 2.0 * xz + z2_row, 0.0)
    return jnp.exp(jnp.clip(-0.5 * r2 + c, -10.0, 10.0))


# ---------------------------------------------------------------------------
# Kernel 1: kzz = rbf_indv(Zid, Zid) + rbf_obsr(Z, Z)          (M x M, jitter in wrapper)
# ---------------------------------------------------------------------------
def kzz_kernel(c_ref,                               # SMEM (2,): [2*log_std_indv, 2*log_std_obsr]
               szid_ref, sz_ref,                    # scaled inducing embeds (M,di), (M,dz)
               zi2c_ref, zi2r_ref,                  # (M,1) / (1,M) squared norms (indv branch)
               zo2c_ref, zo2r_ref,                  # (M,1) / (1,M) squared norms (obsr branch)
               o_ref):
    dn = (((1,), (1,)), ((), ()))                   # contract last dims; no host-side transposes
    xz_i = lax.dot_general(szid_ref[...], szid_ref[...], dn, preferred_element_type=jnp.float32)
    xz_o = lax.dot_general(sz_ref[...], sz_ref[...], dn, preferred_element_type=jnp.float32)
    o_ref[...] = (_rbf_from_parts(zi2c_ref[...], xz_i, zi2r_ref[...], c_ref[0]) +
                  _rbf_from_parts(zo2c_ref[...], xz_o, zo2r_ref[...], c_ref[1]))


# ---------------------------------------------------------------------------
# Kernel 2: all N-scaled work, tiled over N, accumulating the raw l1 quadratic form
# ---------------------------------------------------------------------------
def fused_l1_kernel(nvalid_ref,                                      # SMEM (1,) int32
                    x_ref, xid_ref, y_ref,                           # streamed (tile, *)
                    w1_ref, b1_ref, w2_ref, b2_ref, w3_ref, b3_ref,  # encoder (resident)
                    table_ref, inv_ls_o_ref,                         # scaled indv table, 1/ls_obsr
                    z_bd_ref, z2_row_ref, c_row_ref, rhs2_ref,       # inducing-side operands
                    out_ref,                                         # SMEM (1,1) raw l1 sum
                    acc_ref):                                        # SMEM (1,1) scratch accum
    f32 = jnp.float32
    tile = x_ref.shape[0]
    m2 = z_bd_ref.shape[1]                     # 2 * n_induce
    m = m2 // 2

    # ---- encoder MLP (Dropout == identity in eval); bf16 operands, f32 accumulate ----
    h = jnp.dot(x_ref[...].astype(MXU_DTYPE), w1_ref[...], preferred_element_type=f32) + b1_ref[...]
    h = _celu(h)
    h = jnp.dot(h.astype(MXU_DTYPE), w2_ref[...], preferred_element_type=f32) + b2_ref[...]
    h = _celu(h)
    embed_x = jnp.dot(h.astype(MXU_DTYPE), w3_ref[...], preferred_element_type=f32) + b3_ref[...]

    # ---- in-kernel gather of the individual embeddings via one-hot matmul (exact, f32) ----
    n_rows = table_ref.shape[0]
    cols = lax.broadcasted_iota(jnp.int32, (tile, n_rows), 1)
    onehot = (cols == xid_ref[...]).astype(f32)
    sxid = jnp.dot(onehot, table_ref[...], preferred_element_type=f32)   # (tile, di), pre-scaled

    # ---- squared norms in f32 (keep r2 assembly in f32) ----
    sx = embed_x * inv_ls_o_ref[...]                                     # (tile, dz)
    x2_i = jnp.sum(sxid * sxid, axis=1, keepdims=True)                   # (tile, 1)
    x2_o = jnp.sum(sx * sx, axis=1, keepdims=True)                       # (tile, 1)

    # ---- both RBF branches from ONE matmul against the block-diagonal inducing features ----
    x_cat = jnp.concatenate([sxid, sx], axis=1).astype(MXU_DTYPE)        # (tile, di+dz)
    xz_cat = jnp.dot(x_cat, z_bd_ref[...], preferred_element_type=f32)   # (tile, 2M)
    sel_i = lax.broadcasted_iota(jnp.int32, (1, m2), 1) < m              # first M cols = indv branch
    x2_cat = jnp.where(sel_i, x2_i, x2_o)                                # (tile, 2M)
    k_cat = _rbf_from_parts(x2_cat, xz_cat, z2_row_ref[...], c_row_ref[...])

    # ---- m = first@u and v@1 = (first@L)@1 from one width-2 matmul (rhs duplicated per half) ----
    mv = jnp.dot(k_cat, rhs2_ref[...], preferred_element_type=f32)       # (tile, 2)

    # mask rows that are padding of N
    base = pl.program_id(0) * tile
    rows = lax.broadcasted_iota(jnp.int32, (tile, 1), 0) + base
    mv = mv * (rows < nvalid_ref[0]).astype(f32)

    y = y_ref[...]                                                       # (tile, 1), zero-padded
    m_col = mv[:, 0:1]
    v_col = mv[:, 1:2]
    partial = (jnp.sum(y * y) - 2.0 * jnp.sum(y * m_col)
               + jnp.sum(m_col * m_col) + jnp.sum(v_col * v_col))

    @pl.when(pl.program_id(0) == 0)
    def _():
        acc_ref[0, 0] = jnp.float32(0.0)

    acc_ref[0, 0] += partial

    @pl.when(pl.program_id(0) == pl.num_programs(0) - 1)
    def _():
        out_ref[0, 0] = acc_ref[0, 0]


# ---------------------------------------------------------------------------
# Model (parameters + glue)
# ---------------------------------------------------------------------------
class SparseGPRegressionPallas:
    def __init__(self, input_dim, z_dim, hidden_dim, n_induce, num_indv, indv_dim, key):
        self.n_induce = n_induce
        self.num_indv = num_indv
        keys = jax.random.split(key, 6)

        def lin(k, fan_in, fan_out):
            # weights stored as (in, out) so kernel does x @ W + b (same math as nn.Linear)
            bound = 1.0 / jnp.sqrt(jnp.float32(fan_in))
            kw, kb = jax.random.split(k)
            w = jax.random.uniform(kw, (fan_in, fan_out), jnp.float32, -bound, bound)
            b = jax.random.uniform(kb, (1, fan_out), jnp.float32, -bound, bound)
            return w, b

        self.w1, self.b1 = lin(keys[0], input_dim, hidden_dim)
        self.w2, self.b2 = lin(keys[1], hidden_dim, hidden_dim)
        self.w3, self.b3 = lin(keys[2], hidden_dim, z_dim)

        # RBFKernel params (zeros, like nn.Parameter(torch.zeros(...)))
        self.log_std_indv = jnp.zeros((1,), jnp.float32)
        self.log_ls_indv = jnp.zeros((indv_dim,), jnp.float32)
        self.log_std_obsr = jnp.zeros((1,), jnp.float32)
        self.log_ls_obsr = jnp.zeros((z_dim,), jnp.float32)

        self.indv_embedding = jax.random.uniform(keys[3], (num_indv + n_induce, indv_dim),
                                                 jnp.float32)
        self.embed_Z = jax.random.uniform(keys[4], (n_induce, z_dim), jnp.float32)
        self.log_sigma = jnp.zeros((1,), jnp.float32)

    def forward(self, x, y, xid, u, L):
        f32 = jnp.float32
        m = self.n_induce
        n, input_dim = x.shape
        hidden = self.w1.shape[1]
        z_dim = self.w3.shape[1]
        indv_dim = self.indv_embedding.shape[1]
        n_rows = self.indv_embedding.shape[0]

        ca = 2.0 * self.log_std_indv[0]
        cb = 2.0 * self.log_std_obsr[0]
        sigma2 = jnp.exp(self.log_sigma[0]) ** 2

        inv_ls_i = (1.0 / jnp.exp(self.log_ls_indv))[None, :]              # (1, indv_dim)
        inv_ls_o = (1.0 / jnp.exp(self.log_ls_obsr))[None, :]              # (1, z_dim)

        # ---- M-sized / parameter-side prep (plain JAX, O(M*d)) ----
        table_scaled = self.indv_embedding * inv_ls_i                      # (num_indv+M, indv_dim)
        szid = table_scaled[self.num_indv:self.num_indv + m]               # (M, indv_dim)
        sz = self.embed_Z * inv_ls_o                                       # (M, z_dim)
        zid2 = jnp.sum(szid * szid, axis=1)                                # (M,)
        z2 = jnp.sum(sz * sz, axis=1)                                      # (M,)

        # ---- Pallas kernel 1: inducing Gram (jitter added here, not in-kernel) ----
        kzz_cost = pl.CostEstimate(
            flops=int(2 * m * m * (indv_dim + z_dim) + 10 * m * m),
            transcendentals=int(2 * m * m),
            bytes_accessed=int(4 * (2 * m * (indv_dim + z_dim) + 4 * m + m * m)))
        kzz = pl.pallas_call(
            kzz_kernel,
            in_specs=[_smem_spec()] + [pl.BlockSpec(memory_space=pltpu.MemorySpace.VMEM)] * 6,
            out_specs=pl.BlockSpec(memory_space=pltpu.MemorySpace.VMEM),
            out_shape=jax.ShapeDtypeStruct((m, m), f32),
            cost_estimate=kzz_cost,
        )(jnp.stack([ca, cb]).astype(f32),
          szid, sz,
          zid2.reshape(m, 1), zid2.reshape(1, m),
          z2.reshape(m, 1), z2.reshape(1, m))
        # TODO(synk): for M >~ 2k, tile this call with a 2-D (i, j) grid (v5e scoped-VMEM limit).
        kzz = kzz + FACTOR * jnp.eye(m, dtype=f32)

        # ---- Cholesky / triangular inverse stay in XLA (no Pallas equivalent) ----
        # TODO(synk): reference uses torch.inverse(Lz); a triangular solve is the stable equivalent.
        Lz = jnp.linalg.cholesky(kzz)
        inv_Lz = jax.scipy.linalg.solve_triangular(Lz, jnp.eye(m, dtype=f32), lower=True)

        # ---- M-only GP-factor math hoisted out of the N-scaled kernel (kzz_inv never formed) ----
        ilz_u = inv_Lz @ u                                                 # inv_Lz @ u        (M,1)
        ilz_l = inv_Lz @ L                                                 # inv_Lz @ L        (M,M)
        b_vec = inv_Lz.T @ ilz_u                                           # kzz_inv @ u       (M,1)
        a_rowsum = inv_Lz.T @ jnp.sum(ilz_l, axis=1, keepdims=True)        # (kzz_inv @ L) @ 1 (M,1)
        rhs2 = jnp.concatenate([b_vec, a_rowsum], axis=1)                  # (M, 2)
        rhs2_stacked = jnp.concatenate([rhs2, rhs2], axis=0).astype(f32)   # (2M, 2)

        trace = jnp.sum(ilz_l * ilz_l)        # == trace(kzz_inv @ (L @ L.T))
        uku = jnp.sum(ilz_u * ilz_u)          # == u.T @ kzz_inv @ u
        l2 = ((jnp.sum(jnp.log(jnp.diagonal(Lz))) - jnp.sum(jnp.log(jnp.diagonal(L)))) * 2.0
              + trace + uku)

        # ---- block-diagonal inducing features: both RBF branches in one MXU pass ----
        d_cat = indv_dim + z_dim
        z_bd = jnp.zeros((d_cat, 2 * m), f32)
        z_bd = z_bd.at[:indv_dim, :m].set(szid.T)       # tiny one-time (M,d) transposes
        z_bd = z_bd.at[indv_dim:, m:].set(sz.T)
        z_bd = z_bd.astype(MXU_DTYPE)
        z2_row = jnp.concatenate([zid2, z2])[None, :].astype(f32)                        # (1, 2M)
        c_row = jnp.concatenate([jnp.full((m,), ca), jnp.full((m,), cb)])[None, :].astype(f32)

        # ---- tiling over N (streamed x / xid / y; padded rows are masked in-kernel) ----
        tile = min(N_TILE_MAX, _round_up(n, 8))
        n_pad = _round_up(n, tile)
        pad = n_pad - n
        x_p = jnp.pad(x.astype(f32), ((0, pad), (0, 0)))
        y_p = jnp.pad(y.astype(f32), ((0, pad), (0, 0)))
        xid_p = jnp.pad(xid.astype(jnp.int32), ((0, pad),)).reshape(n_pad, 1)
        n_tiles = n_pad // tile

        w1b = self.w1.astype(MXU_DTYPE)
        w2b = self.w2.astype(MXU_DTYPE)
        w3b = self.w3.astype(MXU_DTYPE)

        fwd_cost = pl.CostEstimate(
            flops=int(2 * n_pad * (input_dim * hidden + hidden * hidden + hidden * z_dim
                                   + n_rows * indv_dim + d_cat * 2 * m + 2 * m * 2)),
            transcendentals=int(n_pad * (2 * hidden + 2 * m)),
            bytes_accessed=int(4 * (n_pad * (input_dim + 2)
                                    + input_dim * hidden + hidden * hidden + hidden * z_dim
                                    + n_rows * indv_dim + d_cat * 2 * m + 8 * m + 1)))

        l1_raw = pl.pallas_call(
            fused_l1_kernel,
            grid=(n_tiles,),
            in_specs=[
                pl.BlockSpec((1,), lambda i: (0,), memory_space=pltpu.MemorySpace.SMEM),  # n valid
                _stream_spec(tile, input_dim),        # x
                _stream_spec(tile, 1),                # xid
                _stream_spec(tile, 1),                # y
                _const_spec((input_dim, hidden)),     # w1 (bf16)
                _const_spec((1, hidden)),             # b1
                _const_spec((hidden, hidden)),        # w2 (bf16)
                _const_spec((1, hidden)),             # b2
                _const_spec((hidden, z_dim)),         # w3 (bf16)
                _const_spec((1, z_dim)),              # b3
                _const_spec((n_rows, indv_dim)),      # scaled individual-embedding table
                _const_spec((1, z_dim)),              # 1 / lengthscale (obsr)
                _const_spec((d_cat, 2 * m)),          # block-diag inducing features (bf16)
                _const_spec((1, 2 * m)),              # [zid2 | z2]
                _const_spec((1, 2 * m)),              # [2*log_std_indv | 2*log_std_obsr]
                _const_spec((2 * m, 2)),              # stacked [kzz_inv@u | (kzz_inv@L)@1]
            ],
            out_specs=pl.BlockSpec((1, 1), lambda i: (0, 0),
                                   memory_space=pltpu.MemorySpace.SMEM),
            out_shape=jax.ShapeDtypeStruct((1, 1), f32),
            scratch_shapes=[pltpu.SMEM((1, 1), jnp.float32)],
            compiler_params=pltpu.CompilerParams(
                dimension_semantics=("arbitrary",),   # accumulator axis
                vmem_limit_bytes=VMEM_LIMIT_BYTES),
            cost_estimate=fwd_cost,
        )(jnp.array([n], jnp.int32),
          x_p, xid_p, y_p,
          w1b, self.b1, w2b, self.b2, w3b, self.b3,
          table_scaled, inv_ls_o,
          z_bd, z2_row, c_row, rhs2_stacked)

        l1 = (0.5 / sigma2) * l1_raw              # (1, 1), == torch l1 / 2
        l2 = (0.5 * l2).reshape(1, 1)             # (1, 1), == torch l2 / 2
        return l1, l2


# ---------------------------------------------------------------------------
# Main
# ---------------------------------------------------------------------------
if __name__ == "__main__":
    key = jax.random.PRNGKey(0)
    k_model, k_x, k_y, k_id, k_u, k_L = jax.random.split(key, 6)

    # small shapes consistent with the module; N is chosen to exercise >1 N-tile and padding
    N, INPUT_DIM, Z_DIM, HIDDEN_DIM = 520, 16, 8, 32
    N_INDUCE, NUM_INDV, INDV_DIM = 8, 4, 8

    model = SparseGPRegressionPallas(INPUT_DIM, Z_DIM, HIDDEN_DIM,
                                     N_INDUCE, NUM_INDV, INDV_DIM, k_model)

    x = jax.random.normal(k_x, (N, INPUT_DIM), jnp.float32)
    y = jax.random.normal(k_y, (N, 1), jnp.float32)
    xid = jax.random.randint(k_id, (N,), 0, NUM_INDV, jnp.int32)
    u = jax.random.normal(k_u, (N_INDUCE, 1), jnp.float32)
    # lower-triangular L with positive diagonal (so log(diag(L)) is well-defined)
    A = jax.random.normal(k_L, (N_INDUCE, N_INDUCE), jnp.float32)
    L = jnp.linalg.cholesky(A @ A.T + jnp.eye(N_INDUCE, dtype=jnp.float32))

    l1, l2 = model.forward(x, y, xid, u, L)
    jax.block_until_ready((l1, l2))
    assert l1.shape == (1, 1) and l2.shape == (1, 1)
    assert bool(jnp.isfinite(l1).all()) and bool(jnp.isfinite(l2).all())
    print("KERNEL_OK")
</pallas_src>

<mosaic_0001>
module attributes {stable_mosaic.version = 11 : i64} {
  func.func @kzz_kernel(%arg0: memref<2xf32, #tpu.memory_space<smem>>, %arg1: memref<8x8xf32, #tpu.memory_space<vmem>>, %arg2: memref<8x8xf32, #tpu.memory_space<vmem>>, %arg3: memref<8x1xf32, #tpu.memory_space<vmem>>, %arg4: memref<1x8xf32, #tpu.memory_space<vmem>>, %arg5: memref<8x1xf32, #tpu.memory_space<vmem>>, %arg6: memref<1x8xf32, #tpu.memory_space<vmem>>, %arg7: memref<8x8xf32, #tpu.memory_space<vmem>>) attributes {dimension_semantics = [], scalar_prefetch = 0 : i64, scratch_operands = 0 : i64, tpu.core_type = #tpu.core_type<tc>} {
    %c0 = arith.constant 0 : index
    %c0_0 = arith.constant 0 : index
    %0 = vector.load %arg1[%c0, %c0_0] : memref<8x8xf32, #tpu.memory_space<vmem>>, vector<8x8xf32>
    %c0_1 = arith.constant 0 : index
    %c0_2 = arith.constant 0 : index
    %1 = vector.load %arg1[%c0_1, %c0_2] : memref<8x8xf32, #tpu.memory_space<vmem>>, vector<8x8xf32>
    %cst = arith.constant dense<0.000000e+00> : vector<8x8xf32>
    %2 = tpu.matmul %0, %1, %cst {dimension_numbers = #tpu.dot_dimension_numbers<[1], [1], [0], [0], [0, 0, 1, 0], [], []>} : vector<8x8xf32>, vector<8x8xf32>, vector<8x8xf32> -> vector<8x8xf32>
    %c0_3 = arith.constant 0 : index
    %c0_4 = arith.constant 0 : index
    %3 = vector.load %arg2[%c0_3, %c0_4] : memref<8x8xf32, #tpu.memory_space<vmem>>, vector<8x8xf32>
    %c0_5 = arith.constant 0 : index
    %c0_6 = arith.constant 0 : index
    %4 = vector.load %arg2[%c0_5, %c0_6] : memref<8x8xf32, #tpu.memory_space<vmem>>, vector<8x8xf32>
    %cst_7 = arith.constant dense<0.000000e+00> : vector<8x8xf32>
    %5 = tpu.matmul %3, %4, %cst_7 {dimension_numbers = #tpu.dot_dimension_numbers<[1], [1], [0], [0], [0, 0, 1, 0], [], []>} : vector<8x8xf32>, vector<8x8xf32>, vector<8x8xf32> -> vector<8x8xf32>
    %c0_8 = arith.constant 0 : index
    %c0_9 = arith.constant 0 : index
    %6 = vector.load %arg3[%c0_8, %c0_9] : memref<8x1xf32, #tpu.memory_space<vmem>>, vector<8x1xf32>
    %c0_10 = arith.constant 0 : index
    %c0_11 = arith.constant 0 : index
    %7 = vector.load %arg4[%c0_10, %c0_11] : memref<1x8xf32, #tpu.memory_space<vmem>>, vector<1x8xf32>
    %c0_12 = arith.constant 0 : index
    %8 = memref.load %arg0[%c0_12] : memref<2xf32, #tpu.memory_space<smem>>
    %cst_13 = arith.constant 2.000000e+00 : f32
    %9 = vector.broadcast %cst_13 : f32 to vector<8x8xf32>
    %10 = arith.mulf %9, %2 : vector<8x8xf32>
    %11 = vector.broadcast %6 : vector<8x1xf32> to vector<8x8xf32>
    %12 = arith.subf %11, %10 : vector<8x8xf32>
    %13 = vector.broadcast %7 : vector<1x8xf32> to vector<8x8xf32>
    %14 = arith.addf %12, %13 : vector<8x8xf32>
    %cst_14 = arith.constant 0.000000e+00 : f32
    %15 = vector.broadcast %cst_14 : f32 to vector<8x8xf32>
    %16 = arith.maximumf %14, %15 : vector<8x8xf32>
    %cst_15 = arith.constant -5.000000e-01 : f32
    %17 = vector.broadcast %cst_15 : f32 to vector<8x8xf32>
    %18 = arith.mulf %17, %16 : vector<8x8xf32>
    %19 = vector.broadcast %8 : f32 to vector<8x8xf32>
    %20 = arith.addf %18, %19 : vector<8x8xf32>
    %cst_16 = arith.constant -1.000000e+01 : f32
    %cst_17 = arith.constant 1.000000e+01 : f32
    %21 = vector.broadcast %cst_16 : f32 to vector<8x8xf32>
    %22 = arith.maximumf %21, %20 : vector<8x8xf32>
    %23 = vector.broadcast %cst_17 : f32 to vector<8x8xf32>
    %24 = arith.minimumf %23, %22 : vector<8x8xf32>
    %25 = math.exp %24 : vector<8x8xf32>
    %c0_18 = arith.constant 0 : index
    %c0_19 = arith.constant 0 : index
    %26 = vector.load %arg5[%c0_18, %c0_19] : memref<8x1xf32, #tpu.memory_space<vmem>>, vector<8x1xf32>
    %c0_20 = arith.constant 0 : index
    %c0_21 = arith.constant 0 : index
    %27 = vector.load %arg6[%c0_20, %c0_21] : memref<1x8xf32, #tpu.memory_space<vmem>>, vector<1x8xf32>
    %c1 = arith.constant 1 : index
    %28 = memref.load %arg0[%c1] : memref<2xf32, #tpu.memory_space<smem>>
    %cst_22 = arith.constant 2.000000e+00 : f32
    %29 = vector.broadcast %cst_22 : f32 to vector<8x8xf32>
    %30 = arith.mulf %29, %5 : vector<8x8xf32>
    %31 = vector.broadcast %26 : vector<8x1xf32> to vector<8x8xf32>
    %32 = arith.subf %31, %30 : vector<8x8xf32>
    %33 = vector.broadcast %27 : vector<1x8xf32> to vector<8x8xf32>
    %34 = arith.addf %32, %33 : vector<8x8xf32>
    %cst_23 = arith.constant 0.000000e+00 : f32
    %35 = vector.broadcast %cst_23 : f32 to vector<8x8xf32>
    %36 = arith.maximumf %34, %35 : vector<8x8xf32>
    %cst_24 = arith.constant -5.000000e-01 : f32
    %37 = vector.broadcast %cst_24 : f32 to vector<8x8xf32>
    %38 = arith.mulf %37, %36 : vector<8x8xf32>
    %39 = vector.broadcast %28 : f32 to vector<8x8xf32>
    %40 = arith.addf %38, %39 : vector<8x8xf32>
    %cst_25 = arith.constant -1.000000e+01 : f32
    %cst_26 = arith.constant 1.000000e+01 : f32
    %41 = vector.broadcast %cst_25 : f32 to vector<8x8xf32>
    %42 = arith.maximumf %41, %40 : vector<8x8xf32>
    %43 = vector.broadcast %cst_26 : f32 to vector<8x8xf32>
    %44 = arith.minimumf %43, %42 : vector<8x8xf32>
    %45 = math.exp %44 : vector<8x8xf32>
    %46 = arith.addf %25, %45 : vector<8x8xf32>
    %c0_27 = arith.constant 0 : index
    %c0_28 = arith.constant 0 : index
    %47 = vector.load %arg7[%c0_27, %c0_28] : memref<8x8xf32, #tpu.memory_space<vmem>>, vector<8x8xf32>
    tpu.vector_store %arg7[%c0_27, %c0_28], %46 {strides = array<i32>} : memref<8x8xf32, #tpu.memory_space<vmem>>, vector<8x8xf32>,
    return
  }
}

</mosaic_0001>

<bundles_post_ra>
// kernel: tpu_custom_call.1
= control target key start
LH: loop header
LB: loop body
LE: loop exit
PB: predicated region body
PF: predicated region fallthrough
CT: control target
= control target key end

     0   :  { %12 = vsyncpa [#allocation4], 0  ;;  %s410_s0 = inlined_call_operand.vmem [shape: f32[2], index: 0, kind: input, shape index: {}]   ;;  %s411_s1 = inlined_call_operand.vmem [shape: f32[8,8], index: 1, kind: input, shape index: {}]   ;;  %s412_s2 = inlined_call_operand.vmem [shape: f32[8,8], index: 2, kind: input, shape index: {}]   ;;  %s413_s3 = inlined_call_operand.vmem [shape: f32[8,1], index: 3, kind: input, shape index: {}]   ;;  %s414_s4 = inlined_call_operand.vmem [shape: f32[1,8], index: 4, kind: input, shape index: {}]   ;;  %s415_s5 = inlined_call_operand.vmem [shape: f32[8,1], index: 5, kind: input, shape index: {}]   ;;  %s416_s6 = inlined_call_operand.vmem [shape: f32[1,8], index: 6, kind: input, shape index: {}]   ;;  %s417_s7 = inlined_call_operand.hbm [shape: f32[8,8], index: 7, kind: output, shape index: {}]  }
   0x1   :  { %13 = vsyncpa [#allocation3], 0  ;;  %s20_s26 = sshll.u32 %s410_s0, 4  ;;  %s21_s26 = int_to_ptr.vmem [resolvable:$true] %s20_s26 }
   0x2   :  { %s289_s27 = scalar_lea.vmem %s21_s26, 16  ;;  %p294_p1 = scmp.lt.s32.totalorder %s21_s26, %s21_s26 }
   0x3   :  { %p290_p0 = scmp.ne.s32.totalorder %s21_s26, %s289_s27  ;;  %p295_p2 = scmp.lt.s32.totalorder %s289_s27, %s289_s27 }
   0x5   :  { %p296_p3 = por %p295_p2, %p294_p1 }
   0x7   :  { %p297_p4 = pnand %p296_p3, %p290_p0 }
   0x9   :  { %300 = shalt.err (!%p297_p4)
}
   0xa   :  { %s327_s28 = smov [#allocation2]  }
   0xb   :  { %23 = dma.vmem_to_smem %s21_s26, 16, %s327_s28, [#allocation4]  }
   0xc   :  { %323 = dma.done.wait [#allocation4], 16  }
   0xd   :  { %324 = vsyncadd [#allocation4], 4294967280 }
   0xe   :  { %39 = sfence }
   0xf   :  { %v40_v0 = vld [vmem:[%s411_s1] sm:$0xff]  ;;  %vm41_vm0 = vcmask 64512   ;;  %v328_v2 = vmov 0.0   ;;  %vm329_vm1 = vmmov 0   ;;  %v330_v4 = vmov 0   ;;  %s191_s11 = sld [smem:[#allocation2]] }
  0x10   :  { %v115_v1 = vld [vmem:[%s412_s2] sm:$0xff]  ;;  %269 = vmatprep.subr.mxu0 %v328_v2  ;;  %274 = vmatprep.subr.mxu1 %v328_v2  ;;  %s262_s12 = sld [smem:[#allocation2 + $0x1]] }
  0x11   :  { %270 = vmatpush3.xpose.msk.msra.mxu0 %vm41_vm0, %v40_v0  ;;  %275 = vmatpush3.xpose.msk.msra.mxu1 %vm41_vm0, %v115_v1  ;;  %v189_v3 = vld [vmem:[%s413_s3] sm:$0xff] }
  0x12   :  { %271 = vmatprep.mubr.msk.f32.mxu0 %vm329_vm1, %v328_v2  ;;  %276 = vmatprep.mubr.msk.f32.mxu1 %vm329_vm1, %v328_v2  ;;  %v214_v5 = vld [vmem:[%s415_s5] sm:$0xff] }
  0x13   :  { %284 = vset.pattern.permute.xlu0 %v330_v4  ;;  %v260_v14 = vld [vmem:[%s414_s4] ss:$0 sm:$0xff]  ;;  %s331_s4 = smov [#allocation5]  }
  0x14   :  { %272 = vmatmul.mubr.msk.f32.vlgmr.msra.gmra.mrb[0].mxu0 %vm41_vm0, %v40_v0  ;;  %277 = vmatmul.mubr.msk.f32.vlgmr.msra.gmra.mrb[0].mxu1 %vm41_vm0, %v115_v1  ;;  %v263_v15 = vld [vmem:[%s416_s6] ss:$0 sm:$0xff]  ;;  %s247_s5 = sshll.u32 %s331_s4, 4  ;;  %s248_s5 = int_to_ptr.vmem [resolvable:$true] %s247_s5 }
  0x15   :  { %195 = vperm.xlu0 %284, %v189_v3   ;;  %v208_v22 = vstv %s191_s11  ;;  %s301_s6 = scalar_lea.vmem %s248_s5, 128  ;;  %p306_p6 = scmp.lt.s32.totalorder %s248_s5, %s248_s5 }
  0x16   :  { %v233_v23 = vstv %s262_s12  ;;  %p302_p5 = scmp.ne.s32.totalorder %s248_s5, %s301_s6  ;;  %p307_p7 = scmp.lt.s32.totalorder %s301_s6, %s301_s6 }
  0x18   :  { %p308_p8 = por %p307_p7, %p306_p6 }
  0x19   :  { %220 = vperm.xlu0 %284, %v214_v5  }
  0x1a   :  { %p309_p9 = pnand %p308_p8, %p302_p5 }
  0x94   :  { %v196_v6 = vpop.permute.xlu0 %195 }
  0x98   :  { %v221_v13 = vpop.permute.xlu0 %220 }
  0xe7   :  { %v111_v7 = vpop.f32.mrb[0].mxu0  ;;  %v185_v8 = vpop.f32.mrb[0].mxu1 }
  0xe8   :  { %v192_v9 = vmul.f32 2.0, %v111_v7  ;;  %v217_v10 = vmul.f32 2.0, %v185_v8  ;;  %v273_v11 = vpop.f32.mrb[1].mxu0  ;;  %v278_v12 = vpop.f32.mrb[1].mxu1 }
  0xea   :  { %v198_v16 = vsub.f32 %v196_v6, %v192_v9  ;;  %v223_v17 = vsub.f32 %v221_v13, %v217_v10 }
  0xec   :  { %v205_v18 = vadd.f32 %v260_v14, %v198_v16  ;;  %v230_v19 = vadd.f32 %v263_v15, %v223_v17 }
  0xee   :  { %v206_v20 = vmax.f32 %v205_v18, 0.0  ;;  %v231_v21 = vmax.f32 %v230_v19, 0.0 }
  0xf0   :  { %v207_v24 = vmul.f32 -0.5, %v206_v20  ;;  %v232_v25 = vmul.f32 -0.5, %v231_v21 }
  0xf2   :  { %v209_v26 = vadd.f32 %v208_v22, %v207_v24  ;;  %v234_v27 = vadd.f32 %v233_v23, %v232_v25 }
  0xf4   :  { %v261_v28 = vclamps-f32 %v209_v26, 10.0  ;;  %v264_v29 = vclamps-f32 %v234_v27, 10.0 }
  0xf6   :  { %v212_v30 = vmul.f32 1.442695, %v261_v28  ;;  %v237_v31 = vmul.f32 1.442695, %v264_v29 }
  0xf8   :  { %285 = vpow2.f32 %v212_v30 }
  0xf9   :  { %287 = vpow2.f32 %v237_v31 }
 0x102   :  { %v286_v32 = vpop.eup %285 }
 0x103   :  { %v288_v33 = vpop.eup %287 }
 0x104   :  { %v239_v34 = vadd.f32 %v288_v33, %v286_v32 }
 0x106   :  { %240 = vst.msk [vmem:[#allocation5] sm:$0xff] %vm41_vm0, %v239_v34 }
 0x107   :  { %312 = shalt.err (!%p309_p9)
}
 0x108   :  { %s313_s18 = scalar_lea.hbm %s417_s7, 128 }
 0x109   :  { %p314_p10 = scmp.ne.s32.totalorder %s417_s7, %s313_s18  ;;  %p317_p11 = scmp.lt.u32.totalorder %s313_s18, %s417_s7 }
 0x10b   :  { %p319_p12 = pnand %p317_p11, %p314_p10 }
 0x10d   :  { %322 = shalt.err (!%p319_p12)
}
 0x10e   :  { %250 = dma.vmem_to_hbm [thread:$0]  %s248_s5, 128, %s417_s7, [#allocation3]  }
 0x10f   :  { %325 = dma.done.wait [#allocation3], 128  }
 0x110   :  { %326 = vsyncadd [#allocation3], 4294967168 }
 0x111   :  { %254 = vsyncpa [#allocation3], 1 }
 0x112   :  { %255 = vsyncpa [#allocation4], 1 }

</bundles_post_ra>
